<compile_context>
chip_gen: v5e
topology: v5e:2x2
jax: 0.10.0
libtpu: 0.0.40
codegen_flags: <defaults>
</compile_context>

<pallas_src>
import math
from functools import partial

import jax
import jax.numpy as jnp
from jax.experimental import pallas as pl
from jax.experimental.pallas import tpu as pltpu  # noqa: F401  (TPU backend extensions)

# ----- small shapes consistent with the module's forward (B, N, C) -----
B = 2          # batch
N = 8          # sequence length (tokens)
C = 32         # embedding dim
NUM_HEADS = 4  # dim divisible by heads -> head_dim = 8
HEAD_DIM = C // NUM_HEADS
SCALE = HEAD_DIM ** (-0.5)


# ---------------------------------------------------------------------------
# Fused attention kernel (runs once; everything VMEM-resident)
# ---------------------------------------------------------------------------
def _attention_kernel(x_ref, wqkv_ref, wproj_ref, bproj_ref, o_ref, *, num_heads, scale):
    x = x_ref[...]                                   # (B, N, C) f32
    Bb, Nn, Cc = x.shape
    hd = Cc // num_heads

    # qkv projection (torch Linear stores weight as (out, in) -> contract on dim 1)
    qkv = jax.lax.dot_general(
        x, wqkv_ref[...], (((2,), (1,)), ((), ())),
        preferred_element_type=jnp.float32)          # (B, N, 3C)

    heads = []
    for h in range(num_heads):                       # static unroll; each matmul batched over B
        q = qkv[:, :, h * hd:(h + 1) * hd]
        k = qkv[:, :, Cc + h * hd:Cc + (h + 1) * hd]
        v = qkv[:, :, 2 * Cc + h * hd:2 * Cc + (h + 1) * hd]

        s = jax.lax.dot_general(
            q, k, (((2,), (2,)), ((0,), (0,))),
            preferred_element_type=jnp.float32) * scale        # (B, N, N)
        s = s - jnp.max(s, axis=-1, keepdims=True)
        p = jnp.exp(s)
        p = p * pl.reciprocal(jnp.sum(p, axis=-1, keepdims=True), approx=True)

        heads.append(jax.lax.dot_general(
            p, v, (((2,), (1,)), ((0,), (0,))),
            preferred_element_type=jnp.float32))               # (B, N, hd)

    o_cat = jnp.concatenate(heads, axis=-1)                    # (B, N, C), heads in order
    o_ref[...] = (jax.lax.dot_general(
        o_cat, wproj_ref[...], (((2,), (1,)), ((), ())),
        preferred_element_type=jnp.float32) + bproj_ref[...])  # proj(+bias)


def attention_forward(x, w_qkv, w_proj, b_proj, *, num_heads=NUM_HEADS):
    Bb, Nn, Cc = x.shape
    scale = (Cc // num_heads) ** (-0.5)
    return pl.pallas_call(
        partial(_attention_kernel, num_heads=num_heads, scale=scale),
        out_shape=jax.ShapeDtypeStruct((Bb, Nn, Cc), jnp.float32),
    )(x, w_qkv, w_proj, b_proj)


# ---------------------------------------------------------------------------
# Pure-JAX reference (mirrors the PyTorch forward exactly)
# ---------------------------------------------------------------------------
def attention_ref(x, w_qkv, w_proj, b_proj, num_heads=NUM_HEADS):
    Bb, Nn, Cc = x.shape
    hd = Cc // num_heads
    scale = hd ** (-0.5)
    qkv = (x @ w_qkv.T).reshape(Bb, Nn, 3, num_heads, hd).transpose(2, 0, 3, 1, 4)
    q, k, v = qkv[0], qkv[1], qkv[2]                            # (B, H, N, hd)
    attn = jnp.einsum('bhqd,bhkd->bhqk', q, k) * scale
    attn = jax.nn.softmax(attn, axis=-1)
    o = jnp.einsum('bhqk,bhkd->bhqd', attn, v)
    o = o.transpose(0, 2, 1, 3).reshape(Bb, Nn, Cc)
    return o @ w_proj.T + b_proj


# ---------------------------------------------------------------------------
# Deterministic example inputs / run
# ---------------------------------------------------------------------------
def init_params(key):
    k1, k2, k3 = jax.random.split(key, 3)
    std = 0.02
    w_qkv = jax.random.normal(k1, (3 * C, C), jnp.float32) * std   # qkv_bias=False (default)
    w_proj = jax.random.normal(k2, (C, C), jnp.float32) * std
    b_proj = jax.random.normal(k3, (1, C), jnp.float32) * std       # stored 2D for TPU layout
    return w_qkv, w_proj, b_proj


if __name__ == "__main__":
    key = jax.random.PRNGKey(0)
    w_qkv, w_proj, b_proj = init_params(key)
    x = jax.random.normal(jax.random.fold_in(key, 999), (B, N, C), dtype=jnp.float32)

    out = jax.jit(attention_forward)(x, w_qkv, w_proj, b_proj)
    out = jax.block_until_ready(out)

    assert out.shape == (B, N, C), out.shape
    assert bool(jnp.all(jnp.isfinite(out)))

    ref = attention_ref(x, w_qkv, w_proj, b_proj)
    assert bool(jnp.allclose(out, ref, rtol=5e-3, atol=5e-3)), (
        float(jnp.max(jnp.abs(out - ref))))

    print("KERNEL_OK")
</pallas_src>

<mosaic_0001>
module attributes {stable_mosaic.version = 11 : i64} {
  func.func @_attention_kernel(%arg0: memref<2x8x32xf32, #tpu.memory_space<vmem>>, %arg1: memref<96x32xf32, #tpu.memory_space<vmem>>, %arg2: memref<32x32xf32, #tpu.memory_space<vmem>>, %arg3: memref<1x32xf32, #tpu.memory_space<vmem>>, %arg4: memref<2x8x32xf32, #tpu.memory_space<vmem>>) attributes {dimension_semantics = [], scalar_prefetch = 0 : i64, scratch_operands = 0 : i64, tpu.core_type = #tpu.core_type<tc>} {
    %c0 = arith.constant 0 : index
    %c0_0 = arith.constant 0 : index
    %c0_1 = arith.constant 0 : index
    %0 = vector.load %arg0[%c0, %c0_0, %c0_1] : memref<2x8x32xf32, #tpu.memory_space<vmem>>, vector<2x8x32xf32>
    %c0_2 = arith.constant 0 : index
    %c0_3 = arith.constant 0 : index
    %1 = vector.load %arg1[%c0_2, %c0_3] : memref<96x32xf32, #tpu.memory_space<vmem>>, vector<96x32xf32>
    %cst = arith.constant dense<0.000000e+00> : vector<2x8x96xf32>
    %2 = tpu.matmul %0, %1, %cst {dimension_numbers = #tpu.dot_dimension_numbers<[2], [1], [0, 1], [0], [0, 0, 0, 1, 1, 0], [], []>} : vector<2x8x32xf32>, vector<96x32xf32>, vector<2x8x96xf32> -> vector<2x8x96xf32>
    %3 = vector.extract_strided_slice %2 {offsets = [0, 0, 0], sizes = [2, 8, 8], strides = [1, 1, 1]} : vector<2x8x96xf32> to vector<2x8x8xf32>
    %4 = vector.extract_strided_slice %2 {offsets = [0, 0, 32], sizes = [2, 8, 8], strides = [1, 1, 1]} : vector<2x8x96xf32> to vector<2x8x8xf32>
    %5 = vector.extract_strided_slice %2 {offsets = [0, 0, 64], sizes = [2, 8, 8], strides = [1, 1, 1]} : vector<2x8x96xf32> to vector<2x8x8xf32>
    %cst_4 = arith.constant dense<0.000000e+00> : vector<2x8x8xf32>
    %6 = tpu.matmul %3, %4, %cst_4 {dimension_numbers = #tpu.dot_dimension_numbers<[2], [2], [1], [1], [0, 0, 0, 1, 1, 1], [0], [0]>} : vector<2x8x8xf32>, vector<2x8x8xf32>, vector<2x8x8xf32> -> vector<2x8x8xf32>
    %cst_5 = arith.constant 0.353553385 : f32
    %7 = vector.broadcast %cst_5 : f32 to vector<2x8x8xf32>
    %8 = arith.mulf %6, %7 : vector<2x8x8xf32>
    %cst_6 = arith.constant dense<0xFF800000> : vector<2x8xf32>
    %9 = vector.multi_reduction <maximumf>, %8, %cst_6 [2] : vector<2x8x8xf32> to vector<2x8xf32>
    %10 = vector.shape_cast %9 : vector<2x8xf32> to vector<2x8x1xf32>
    %11 = vector.broadcast %10 : vector<2x8x1xf32> to vector<2x8x8xf32>
    %12 = arith.subf %8, %11 : vector<2x8x8xf32>
    %13 = math.exp %12 : vector<2x8x8xf32>
    %cst_7 = arith.constant dense<0.000000e+00> : vector<2x8xf32>
    %14 = vector.multi_reduction <add>, %13, %cst_7 [2] : vector<2x8x8xf32> to vector<2x8xf32>
    %15 = vector.shape_cast %14 : vector<2x8xf32> to vector<2x8x1xf32>
    %16 = tpu.reciprocal %15 {approx = true} : vector<2x8x1xf32> -> vector<2x8x1xf32>
    %17 = vector.broadcast %16 : vector<2x8x1xf32> to vector<2x8x8xf32>
    %18 = arith.mulf %13, %17 : vector<2x8x8xf32>
    %cst_8 = arith.constant dense<0.000000e+00> : vector<2x8x8xf32>
    %19 = tpu.matmul %18, %5, %cst_8 {dimension_numbers = #tpu.dot_dimension_numbers<[2], [1], [1], [2], [0, 0, 0, 1, 1, 2], [0], [0]>} : vector<2x8x8xf32>, vector<2x8x8xf32>, vector<2x8x8xf32> -> vector<2x8x8xf32>
    %20 = vector.extract_strided_slice %2 {offsets = [0, 0, 8], sizes = [2, 8, 8], strides = [1, 1, 1]} : vector<2x8x96xf32> to vector<2x8x8xf32>
    %21 = vector.extract_strided_slice %2 {offsets = [0, 0, 40], sizes = [2, 8, 8], strides = [1, 1, 1]} : vector<2x8x96xf32> to vector<2x8x8xf32>
    %22 = vector.extract_strided_slice %2 {offsets = [0, 0, 72], sizes = [2, 8, 8], strides = [1, 1, 1]} : vector<2x8x96xf32> to vector<2x8x8xf32>
    %cst_9 = arith.constant dense<0.000000e+00> : vector<2x8x8xf32>
    %23 = tpu.matmul %20, %21, %cst_9 {dimension_numbers = #tpu.dot_dimension_numbers<[2], [2], [1], [1], [0, 0, 0, 1, 1, 1], [0], [0]>} : vector<2x8x8xf32>, vector<2x8x8xf32>, vector<2x8x8xf32> -> vector<2x8x8xf32>
    %cst_10 = arith.constant 0.353553385 : f32
    %24 = vector.broadcast %cst_10 : f32 to vector<2x8x8xf32>
    %25 = arith.mulf %23, %24 : vector<2x8x8xf32>
    %cst_11 = arith.constant dense<0xFF800000> : vector<2x8xf32>
    %26 = vector.multi_reduction <maximumf>, %25, %cst_11 [2] : vector<2x8x8xf32> to vector<2x8xf32>
    %27 = vector.shape_cast %26 : vector<2x8xf32> to vector<2x8x1xf32>
    %28 = vector.broadcast %27 : vector<2x8x1xf32> to vector<2x8x8xf32>
    %29 = arith.subf %25, %28 : vector<2x8x8xf32>
    %30 = math.exp %29 : vector<2x8x8xf32>
    %cst_12 = arith.constant dense<0.000000e+00> : vector<2x8xf32>
    %31 = vector.multi_reduction <add>, %30, %cst_12 [2] : vector<2x8x8xf32> to vector<2x8xf32>
    %32 = vector.shape_cast %31 : vector<2x8xf32> to vector<2x8x1xf32>
    %33 = tpu.reciprocal %32 {approx = true} : vector<2x8x1xf32> -> vector<2x8x1xf32>
    %34 = vector.broadcast %33 : vector<2x8x1xf32> to vector<2x8x8xf32>
    %35 = arith.mulf %30, %34 : vector<2x8x8xf32>
    %cst_13 = arith.constant dense<0.000000e+00> : vector<2x8x8xf32>
    %36 = tpu.matmul %35, %22, %cst_13 {dimension_numbers = #tpu.dot_dimension_numbers<[2], [1], [1], [2], [0, 0, 0, 1, 1, 2], [0], [0]>} : vector<2x8x8xf32>, vector<2x8x8xf32>, vector<2x8x8xf32> -> vector<2x8x8xf32>
    %37 = vector.extract_strided_slice %2 {offsets = [0, 0, 16], sizes = [2, 8, 8], strides = [1, 1, 1]} : vector<2x8x96xf32> to vector<2x8x8xf32>
    %38 = vector.extract_strided_slice %2 {offsets = [0, 0, 48], sizes = [2, 8, 8], strides = [1, 1, 1]} : vector<2x8x96xf32> to vector<2x8x8xf32>
    %39 = vector.extract_strided_slice %2 {offsets = [0, 0, 80], sizes = [2, 8, 8], strides = [1, 1, 1]} : vector<2x8x96xf32> to vector<2x8x8xf32>
    %cst_14 = arith.constant dense<0.000000e+00> : vector<2x8x8xf32>
    %40 = tpu.matmul %37, %38, %cst_14 {dimension_numbers = #tpu.dot_dimension_numbers<[2], [2], [1], [1], [0, 0, 0, 1, 1, 1], [0], [0]>} : vector<2x8x8xf32>, vector<2x8x8xf32>, vector<2x8x8xf32> -> vector<2x8x8xf32>
    %cst_15 = arith.constant 0.353553385 : f32
    %41 = vector.broadcast %cst_15 : f32 to vector<2x8x8xf32>
    %42 = arith.mulf %40, %41 : vector<2x8x8xf32>
    %cst_16 = arith.constant dense<0xFF800000> : vector<2x8xf32>
    %43 = vector.multi_reduction <maximumf>, %42, %cst_16 [2] : vector<2x8x8xf32> to vector<2x8xf32>
    %44 = vector.shape_cast %43 : vector<2x8xf32> to vector<2x8x1xf32>
    %45 = vector.broadcast %44 : vector<2x8x1xf32> to vector<2x8x8xf32>
    %46 = arith.subf %42, %45 : vector<2x8x8xf32>
    %47 = math.exp %46 : vector<2x8x8xf32>
    %cst_17 = arith.constant dense<0.000000e+00> : vector<2x8xf32>
    %48 = vector.multi_reduction <add>, %47, %cst_17 [2] : vector<2x8x8xf32> to vector<2x8xf32>
    %49 = vector.shape_cast %48 : vector<2x8xf32> to vector<2x8x1xf32>
    %50 = tpu.reciprocal %49 {approx = true} : vector<2x8x1xf32> -> vector<2x8x1xf32>
    %51 = vector.broadcast %50 : vector<2x8x1xf32> to vector<2x8x8xf32>
    %52 = arith.mulf %47, %51 : vector<2x8x8xf32>
    %cst_18 = arith.constant dense<0.000000e+00> : vector<2x8x8xf32>
    %53 = tpu.matmul %52, %39, %cst_18 {dimension_numbers = #tpu.dot_dimension_numbers<[2], [1], [1], [2], [0, 0, 0, 1, 1, 2], [0], [0]>} : vector<2x8x8xf32>, vector<2x8x8xf32>, vector<2x8x8xf32> -> vector<2x8x8xf32>
    %54 = vector.extract_strided_slice %2 {offsets = [0, 0, 24], sizes = [2, 8, 8], strides = [1, 1, 1]} : vector<2x8x96xf32> to vector<2x8x8xf32>
    %55 = vector.extract_strided_slice %2 {offsets = [0, 0, 56], sizes = [2, 8, 8], strides = [1, 1, 1]} : vector<2x8x96xf32> to vector<2x8x8xf32>
    %56 = vector.extract_strided_slice %2 {offsets = [0, 0, 88], sizes = [2, 8, 8], strides = [1, 1, 1]} : vector<2x8x96xf32> to vector<2x8x8xf32>
    %cst_19 = arith.constant dense<0.000000e+00> : vector<2x8x8xf32>
    %57 = tpu.matmul %54, %55, %cst_19 {dimension_numbers = #tpu.dot_dimension_numbers<[2], [2], [1], [1], [0, 0, 0, 1, 1, 1], [0], [0]>} : vector<2x8x8xf32>, vector<2x8x8xf32>, vector<2x8x8xf32> -> vector<2x8x8xf32>
    %cst_20 = arith.constant 0.353553385 : f32
    %58 = vector.broadcast %cst_20 : f32 to vector<2x8x8xf32>
    %59 = arith.mulf %57, %58 : vector<2x8x8xf32>
    %cst_21 = arith.constant dense<0xFF800000> : vector<2x8xf32>
    %60 = vector.multi_reduction <maximumf>, %59, %cst_21 [2] : vector<2x8x8xf32> to vector<2x8xf32>
    %61 = vector.shape_cast %60 : vector<2x8xf32> to vector<2x8x1xf32>
    %62 = vector.broadcast %61 : vector<2x8x1xf32> to vector<2x8x8xf32>
    %63 = arith.subf %59, %62 : vector<2x8x8xf32>
    %64 = math.exp %63 : vector<2x8x8xf32>
    %cst_22 = arith.constant dense<0.000000e+00> : vector<2x8xf32>
    %65 = vector.multi_reduction <add>, %64, %cst_22 [2] : vector<2x8x8xf32> to vector<2x8xf32>
    %66 = vector.shape_cast %65 : vector<2x8xf32> to vector<2x8x1xf32>
    %67 = tpu.reciprocal %66 {approx = true} : vector<2x8x1xf32> -> vector<2x8x1xf32>
    %68 = vector.broadcast %67 : vector<2x8x1xf32> to vector<2x8x8xf32>
    %69 = arith.mulf %64, %68 : vector<2x8x8xf32>
    %cst_23 = arith.constant dense<0.000000e+00> : vector<2x8x8xf32>
    %70 = tpu.matmul %69, %56, %cst_23 {dimension_numbers = #tpu.dot_dimension_numbers<[2], [1], [1], [2], [0, 0, 0, 1, 1, 2], [0], [0]>} : vector<2x8x8xf32>, vector<2x8x8xf32>, vector<2x8x8xf32> -> vector<2x8x8xf32>
    %71 = tpu.concatenate %19, %36, %53, %70 in 2 : vector<2x8x8xf32>, vector<2x8x8xf32>, vector<2x8x8xf32>, vector<2x8x8xf32> -> vector<2x8x32xf32>
    %c0_24 = arith.constant 0 : index
    %c0_25 = arith.constant 0 : index
    %72 = vector.load %arg2[%c0_24, %c0_25] : memref<32x32xf32, #tpu.memory_space<vmem>>, vector<32x32xf32>
    %cst_26 = arith.constant dense<0.000000e+00> : vector<2x8x32xf32>
    %73 = tpu.matmul %71, %72, %cst_26 {dimension_numbers = #tpu.dot_dimension_numbers<[2], [1], [0, 1], [0], [0, 0, 0, 1, 1, 0], [], []>} : vector<2x8x32xf32>, vector<32x32xf32>, vector<2x8x32xf32> -> vector<2x8x32xf32>
    %c0_27 = arith.constant 0 : index
    %c0_28 = arith.constant 0 : index
    %74 = vector.load %arg3[%c0_27, %c0_28] : memref<1x32xf32, #tpu.memory_space<vmem>>, vector<1x32xf32>
    %75 = vector.shape_cast %74 : vector<1x32xf32> to vector<1x1x32xf32>
    %76 = vector.broadcast %75 : vector<1x1x32xf32> to vector<2x8x32xf32>
    %77 = arith.addf %73, %76 : vector<2x8x32xf32>
    %c0_29 = arith.constant 0 : index
    %c0_30 = arith.constant 0 : index
    %c0_31 = arith.constant 0 : index
    %78 = vector.load %arg4[%c0_29, %c0_30, %c0_31] : memref<2x8x32xf32, #tpu.memory_space<vmem>>, vector<2x8x32xf32>
    tpu.vector_store %arg4[%c0_29, %c0_30, %c0_31], %77 {strides = array<i32>} : memref<2x8x32xf32, #tpu.memory_space<vmem>>, vector<2x8x32xf32>,
    return
  }
}

</mosaic_0001>

<bundles_post_ra>
// kernel: attention_forward.1
= control target key start
LH: loop header
LB: loop body
LE: loop exit
PB: predicated region body
PF: predicated region fallthrough
CT: control target
= control target key end

     0   :  { %vm32_vm0 = vcmask 261120   ;;  %s1066_s0 = inlined_call_operand.vmem [shape: f32[2,8,32], index: 0, kind: input, shape index: {}]   ;;  %s1067_s1 = inlined_call_operand.vmem [shape: f32[96,32], index: 1, kind: input, shape index: {}]   ;;  %s1068_s2 = inlined_call_operand.vmem [shape: f32[32,32], index: 2, kind: input, shape index: {}]   ;;  %s1069_s3 = inlined_call_operand.vmem [shape: f32[1,32], index: 3, kind: input, shape index: {}]   ;;  %s1070_s4 = inlined_call_operand.hbm [shape: f32[2,8,32], index: 4, kind: output, shape index: {}]  }
   0x1   :  { %v31_v0 = vld [vmem:[%s1067_s1 + $0x58] sm:$0xff]  ;;  %v30_v1 = vld [vmem:[%s1067_s1 + $0x50] sm:$0xff] }
   0x2   :  { %726 = vmatpush.xpose.msk.msra.mxu0 %vm32_vm0, %v31_v0 }
   0x3   :  { %9 = vsyncpa [#allocation3], 0  ;;  %v29_v2 = vld [vmem:[%s1067_s1 + $0x48] sm:$0xff]  ;;  %v28_v3 = vld [vmem:[%s1067_s1 + $0x40] sm:$0xff]  ;;  %s850_s17 = smov 88   ;;  %s852_s18 = smov 120  }
   0x4   :  { %v27_v4 = vld [vmem:[%s1067_s1 + $0x38] sm:$0xff]  ;;  %v26_v5 = vld [vmem:[%s1067_s1 + $0x30] sm:$0xff]  ;;  %v25_v6 = vld [vmem:[%s1067_s1 + $0x28] sm:$0xff]  ;;  %s854_s19 = smov 80   ;;  %vm101_vm1 = vcmask 64512   ;;  %s855_s20 = smov 64  }
   0x5   :  { %v24_v7 = vld [vmem:[%s1067_s1 + $0x20] sm:$0xff]  ;;  %v23_v8 = vld [vmem:[%s1067_s1 + $0x18] sm:$0xff]  ;;  %v22_v9 = vld [vmem:[%s1067_s1 + $0x10] sm:$0xff]  ;;  %s856_s21 = smov 56   ;;  %s857_s22 = smov 104   ;;  %vm651_vm2 = vcmask 130048  }
   0x6   :  { %727 = vmatpush.xpose.msk.msra.mxu0 %vm32_vm0, %v30_v1  ;;  %v21_v10 = vld [vmem:[%s1067_s1 + $0x8] sm:$0xff]  ;;  %v20_v11 = vld [vmem:[%s1067_s1] sm:$0xff]  ;;  %s851_s1 = smov 96   ;;  %s858_s23 = smov 72   ;;  %vm654_vm3 = vcmask 195584  }
   0x7   :  { %v18_v12 = vld [vmem:[%s1066_s0] sm:$0xff]  ;;  %v19_v13 = vld [vmem:[%s1066_s0 + $0x8] sm:$0xff]  ;;  %s853_s0 = smov 112   ;;  %s859_s24 = smov 48  }
   0x8   :  { %s860_s25 = smov 40   ;;  %s861_s26 = smov 16  }
   0x9   :  { %s862_s27 = smov 8   ;;  %s863_s6 = smov 24  }
   0xa   :  { %728 = vmatpush.xpose.msk.msra.mxu0 %vm32_vm0, %v29_v2  ;;  %s864_s12 = smov [#allocation2]   ;;  %s714_s16 = sshll.u32 %s1070_s4, 4  ;;  %s715_s16 = int_to_ptr.hbm [resolvable:$true] %s714_s16 }
   0xb   :  { %s712_s13 = sshll.u32 %s864_s12, 4  ;;  %s713_s13 = int_to_ptr.vmem [resolvable:$true] %s712_s13 }
   0xe   :  { %729 = vmatpush.xpose.msk.msra.mxu0 %vm32_vm0, %v28_v3 }
  0x12   :  { %730 = vmatpush.xpose.msk.msra.mxu0 %vm32_vm0, %v27_v4 }
  0x16   :  { %731 = vmatpush.xpose.msk.msra.mxu0 %vm32_vm0, %v26_v5 }
  0x1a   :  { %732 = vmatpush.xpose.msk.msra.mxu0 %vm32_vm0, %v25_v6 }
  0x1e   :  { %733 = vmatpush.xpose.msk.msra.mxu0 %vm32_vm0, %v24_v7 }
  0x22   :  { %734 = vmatpush.xpose.msk.msra.mxu0 %vm32_vm0, %v23_v8 }
  0x26   :  { %735 = vmatpush.xpose.msk.msra.mxu0 %vm32_vm0, %v22_v9 }
  0x2a   :  { %736 = vmatpush.xpose.msk.msra.mxu0 %vm32_vm0, %v21_v10 }
  0x2e   :  { %737 = vmatpush.xpose.msk.msra.mxu0 %vm32_vm0, %v20_v11 }
  0x31   :  { %738 = vmatmul.msk.f32.vlgmr.msra.gmra.mxu0 %vm32_vm0, %v18_v12 }
  0x39   :  { %739 = vmatmul.msk.f32.gmra.mxu0 %vm32_vm0, %v19_v13 }
  0xae   :  { %v947_v14 = vpop.f32.mrf.mxu0 }
  0xaf   :  { %231 = vrot.lane.b32.xlu1 %v947_v14, %s850_s17  ;;  %99 = vrot.lane.b32.xlu0 %v947_v14, %s851_s1 }
  0xb6   :  { %v951_v15 = vpop.f32.mrf.mxu0 }
  0xb7   :  { %229 = vrot.lane.b32.xlu1 %v947_v14, %s852_s18  ;;  %127 = vrot.lane.b32.xlu0 %v951_v15, %s851_s1  ;;  %v786_v33 = vpack.i.bf16 %v951_v15, %v947_v14 }
  0xb8   :  { %259 = vrot.lane.b32.xlu2 %v951_v15, %s850_s17  ;;  %s865_s17 = smov 128  }
  0xbf   :  { %361 = vrot.lane.b32.xlu1 %v947_v14, %s853_s0  ;;  %363 = vrot.lane.b32.xlu0 %v947_v14, %s854_s19 }
  0xc0   :  { %257 = vrot.lane.b32.xlu2 %v951_v15, %s852_s18 }
 0x112   :  { %v260_v18 = vpop.permute.xlu2 %259 }
 0x11a   :  { %v258_v22 = vpop.permute.xlu2 %257 }
 0x121   :  { %v232_v16 = vpop.permute.xlu1 %231  ;;  %v100_v17 = vpop.permute.xlu0 %99 }
 0x122   :  { %740 = vmatpush.xpose.msk.msra.mxu2 %vm101_vm1, %v100_v17  ;;  %746 = vmatpush.xpose.msk.msra.mxu1 %vm101_vm1, %v232_v16 }
 0x125   :  { %741 = vmatmul.msk.f32.vlgmr.msra.gmra.mxu2 %vm101_vm1, %v947_v14 }
 0x129   :  { %v230_v19 = vpop.permute.xlu1 %229  ;;  %v128_v20 = vpop.permute.xlu0 %127 }
 0x12a   :  { %742 = vmatpush.xpose.msk.msrb.mxu2 %vm101_vm1, %v128_v20  ;;  %747 = vmatmul.msk.f32.vlgmr.msra.gmra.mxu1 %vm101_vm1, %v230_v19 }
 0x12d   :  { %743 = vmatmul.msk.f32.vlgmr.msrb.gmra.mxu2 %vm101_vm1, %v951_v15 }
 0x12e   :  { %748 = vmatpush.xpose.msk.msra.mxu2 %vm101_vm1, %v260_v18 }
 0x131   :  { %v364_v21 = vpop.permute.xlu0 %363  ;;  %v362_v23 = vpop.permute.xlu1 %361 }
 0x132   :  { %752 = vmatpush.xpose.msk.msrb.mxu2 %vm101_vm1, %v364_v21 }
 0x135   :  { %749 = vmatmul.msk.f32.vlgmr.msra.gmra.mxu2 %vm101_vm1, %v258_v22 }
 0x13d   :  { %753 = vmatmul.msk.f32.vlgmr.msrb.gmra.mxu2 %vm101_vm1, %v362_v23 }
 0x1a7   :  { %v254_v24 = vpop.f32.mrf.mxu1 }
 0x1a8   :  { %v285_v25 = vmul.f32 0.35355338, %v254_v24  ;;  %v123_v26 = vpop.f32.mrf.mxu2 }
 0x1a9   :  { %v153_v27 = vmul.f32 0.35355338, %v123_v26 }
 0x1aa   :  { %v287_v28 = vsel %vm101_vm1, %v285_v25, -inf }
 0x1ab   :  { %288 = vmax.xlane.f32.xlu1 %v287_v28  ;;  %v155_v29 = vsel %vm101_vm1, %v153_v27, -inf }
 0x1ac   :  { %156 = vmax.xlane.f32.xlu2 %v155_v29 }
 0x1b0   :  { %v150_v30 = vpop.f32.mrf.mxu2 }
 0x1b1   :  { %v154_v31 = vmul.f32 0.35355338, %v150_v30 }
 0x1b3   :  { %v158_v32 = vsel %vm101_vm1, %v154_v31, -inf }
 0x1b4   :  { %159 = vmax.xlane.f32.xlu0 %v158_v32 }
 0x1b8   :  { %v282_v34 = vpop.f32.mrf.mxu2 }
 0x1b9   :  { %v286_v35 = vmul.f32 0.35355338, %v282_v34 }
 0x1bb   :  { %v290_v36 = vsel %vm101_vm1, %v286_v35, -inf }
 0x1c0   :  { %v386_v37 = vpop.f32.mrf.mxu2 }
 0x1c1   :  { %v417_v38 = vmul.f32 0.35355338, %v386_v37 }
 0x1c3   :  { %v419_v39 = vsel %vm101_vm1, %v417_v38, -inf }
 0x1c4   :  { %787 = vrot.lane.b32.xlu2 %v786_v33, %s855_s20 }
 0x1ed   :  { %291 = vmax.xlane.f32.xlu2 %v290_v36 }
 0x1f5   :  { %420 = vmax.xlane.f32.xlu2 %v419_v39 }
 0x20d   :  { %389 = vrot.lane.b32.xlu2 %v951_v15, %s853_s0 }
 0x215   :  { %335 = vrot.lane.b32.xlu2 %v951_v15, %s856_s21 }
 0x21d   :  { %493 = vrot.lane.b32.xlu2 %v947_v14, %s857_s22 }
 0x21e   :  { %v289_v40 = vpop.xlane.xlu1 %288 }
 0x21f   :  { %v293_v41 = vsub.f32 %v285_v25, %v289_v40  ;;  %v157_v42 = vpop.xlane.xlu2 %156 }
 0x220   :  { %v161_v44 = vsub.f32 %v153_v27, %v157_v42 }
 0x221   :  { %v295_v43 = vmul.f32 1.442695, %v293_v41 }
 0x222   :  { %v163_v45 = vmul.f32 1.442695, %v161_v44 }
 0x223   :  { %792 = vpow2.f32 %v295_v43 }
 0x224   :  { %794 = vpow2.f32 %v163_v45 }
 0x225   :  { %523 = vrot.lane.b32.xlu2 %v951_v15, %s858_s23 }
 0x227   :  { %v788_v46 = vpop.permute.xlu2 %787  ;;  %v160_v47 = vpop.xlane.xlu0 %159 }
 0x228   :  { %v162_v48 = vsub.f32 %v154_v31, %v160_v47  ;;  %v789_v49 = vunpack.i.l.bf16 %v788_v46  ;;  %v790_v50 = vunpack.i.h.bf16 %v788_v46 }
 0x229   :  { %v793_v51 = vpop.eup %792 }
 0x22a   :  { %v165_v52 = vmul.f32 1.442695, %v162_v48  ;;  %198 = vmatpush.msra.mxu3 %v789_v49  ;;  %v299_v53 = vsel %vm101_vm1, %v793_v51, 0.0  ;;  %v795_v54 = vpop.eup %794 }
 0x22b   :  { %300 = vadd.xlane.f32.xlu0 %v299_v53  ;;  %v167_v56 = vsel %vm101_vm1, %v795_v54, 0.0 }
 0x22c   :  { %224 = vmatpush.msrb.mxu3 %v790_v50  ;;  %796 = vpow2.f32 %v165_v52 }
 0x232   :  { %v797_v55 = vpop.eup %796 }
 0x233   :  { %168 = vadd.xlane.f32.xlu0 %v167_v56  ;;  %v170_v57 = vsel %vm101_vm1, %v797_v55, 0.0 }
 0x234   :  { %171 = vadd.xlane.f32.xlu1 %v170_v57 }
 0x247   :  { %391 = vrot.lane.b32.xlu0 %v951_v15, %s854_s19 }
 0x24d   :  { %309 = vrot.lane.b32.xlu1 %v947_v14, %s856_s21 }
 0x260   :  { %v292_v58 = vpop.xlane.xlu2 %291 }
 0x261   :  { %v294_v59 = vsub.f32 %v286_v35, %v292_v58 }
 0x263   :  { %v297_v60 = vmul.f32 1.442695, %v294_v59 }
 0x265   :  { %798 = vpow2.f32 %v297_v60 }
 0x268   :  { %v421_v61 = vpop.xlane.xlu2 %420 }
 0x269   :  { %v425_v62 = vsub.f32 %v417_v38, %v421_v61 }
 0x26b   :  { %v427_v63 = vmul.f32 1.442695, %v425_v62  ;;  %v799_v0 = vpop.eup %798 }
 0x26c   :  { %v302_v2 = vsel %vm101_vm1, %v799_v0, 0.0 }
 0x26d   :  { %800 = vpow2.f32 %v427_v63 }
 0x270   :  { %v390_v1 = vpop.permute.xlu2 %389 }
 0x271   :  { %303 = vadd.xlane.f32.xlu0 %v302_v2 }
 0x273   :  { %v801_v3 = vpop.eup %800 }
 0x274   :  { %v431_v4 = vsel %vm101_vm1, %v801_v3, 0.0 }
 0x277   :  { %432 = vadd.xlane.f32.xlu1 %v431_v4 }
 0x278   :  { %v336_v5 = vpop.permute.xlu2 %335 }
 0x279   :  { %356 = vmatpush.msrb.mxu1 %v336_v5  ;;  %v660_v5 = vld [vmem:[%s1068_s2 + $0x18] sm:$0xff] }
 0x280   :  { %v494_v23 = vpop.permute.xlu2 %493 }
 0x285   :  { %495 = vrot.lane.b32.xlu0 %v947_v14, %s858_s23 }
 0x288   :  { %v524_v28 = vpop.permute.xlu2 %523 }
 0x28d   :  { %441 = vrot.lane.b32.xlu0 %v947_v14, %s859_s24 }
 0x295   :  { %521 = vrot.lane.b32.xlu0 %v951_v15, %s857_s22 }
 0x29e   :  { %v301_v6 = vpop.xlane.xlu0 %300 }
 0x2a6   :  { %v169_v7 = vpop.xlane.xlu0 %168 }
 0x2a7   :  { %802 = vrcp.f32 %v169_v7  ;;  %v172_v8 = vpop.xlane.xlu1 %171 }
 0x2a8   :  { %804 = vrcp.f32 %v172_v8 }
 0x2a9   :  { %806 = vrcp.f32 %v301_v6  ;;  %v659_v6 = vld [vmem:[%s1068_s2 + $0x10] sm:$0xff] }
 0x2ad   :  { %v803_v9 = vpop.eup %802 }
 0x2ae   :  { %v175_v10 = vmul.f32 %v803_v9, %v795_v54  ;;  %v805_v11 = vpop.eup %804 }
 0x2af   :  { %v176_v12 = vmul.f32 %v805_v11, %v797_v55  ;;  %v807_v13 = vpop.eup %806  ;;  %v657_v11 = vld [vmem:[%s1068_s2] sm:$0xff] }
 0x2b0   :  { %744 = vmatmul.msk.f32.vlgmr.msra.gmra.mxu3 %vm101_vm1, %v175_v10  ;;  %v307_v16 = vmul.f32 %v807_v13, %v793_v51  ;;  %v658_v10 = vld [vmem:[%s1068_s2 + $0x8] sm:$0xff] }
 0x2b8   :  { %745 = vmatmul.msk.f32.vlgmr.msrb.gmra.mxu3 %vm101_vm1, %v176_v12 }
 0x2b9   :  { %v392_v18 = vpop.permute.xlu0 %391 }
 0x2bf   :  { %v310_v17 = vpop.permute.xlu1 %309 }
 0x2c0   :  { %330 = vmatpush.msra.mxu3 %v310_v17 }
 0x2c1   :  { %750 = vmatmul.msk.f32.vlgmr.msra.gmra.mxu3 %vm101_vm1, %v307_v16 }
 0x2c2   :  { %754 = vmatpush.xpose.msk.msrb.mxu3 %vm101_vm1, %v392_v18 }
 0x2c9   :  { %755 = vmatmul.msk.f32.vlgmr.msrb.gmra.mxu3 %vm101_vm1, %v390_v1 }
 0x2e4   :  { %v304_v19 = vpop.xlane.xlu0 %303 }
 0x2e5   :  { %808 = vrcp.f32 %v304_v19 }
 0x2ea   :  { %v433_v22 = vpop.xlane.xlu1 %432 }
 0x2eb   :  { %v809_v20 = vpop.eup %808  ;;  %810 = vrcp.f32 %v433_v22 }
 0x2ec   :  { %v308_v21 = vmul.f32 %v809_v20, %v799_v0 }
 0x2ee   :  { %751 = vmatmul.msk.f32.vlgmr.msrb.gmra.mxu1 %vm101_vm1, %v308_v21 }
 0x2f1   :  { %v811_v25 = vpop.eup %810 }
 0x2f2   :  { %v439_v26 = vmul.f32 %v811_v25, %v801_v3 }
 0x2f7   :  { %v496_v24 = vpop.permute.xlu0 %495 }
 0x2f8   :  { %758 = vmatpush.xpose.msk.msra.mxu3 %vm101_vm1, %v496_v24 }
 0x2fb   :  { %759 = vmatmul.msk.f32.vlgmr.msra.gmra.mxu3 %vm101_vm1, %v494_v23 }
 0x2ff   :  { %v442_v27 = vpop.permute.xlu0 %441 }
 0x300   :  { %462 = vmatpush.msra.mxu1 %v442_v27 }
 0x301   :  { %756 = vmatmul.msk.f32.vlgmr.msra.gmra.mxu1 %vm101_vm1, %v439_v26  ;;  %v791_v26 = vld [vmem:[%s1069_s3] ss:$0 sm:$0xff] }
 0x302   :  { %760 = vmatpush.xpose.msk.msrb.mxu1 %vm101_vm1, %v524_v28 }
 0x306   :  { %764 = vmatpush.xpose.msk.msra.mxu1 %vm32_vm0, %v660_v5 }
 0x307   :  { %v522_v29 = vpop.permute.xlu0 %521 }
 0x309   :  { %761 = vmatmul.msk.f32.vlgmr.msrb.gmra.mxu1 %vm101_vm1, %v522_v29 }
 0x30a   :  { %765 = vmatpush.xpose.msk.msra.mxu1 %vm32_vm0, %v659_v6 }
 0x30e   :  { %766 = vmatpush.xpose.msk.msra.mxu1 %vm32_vm0, %v658_v10 }
 0x312   :  { %767 = vmatpush.xpose.msk.msra.mxu1 %vm32_vm0, %v657_v11 }
 0x333   :  { %v1014_v30 = vpop.f32.mrf.mxu3 }
 0x33b   :  { %v1016_v31 = vpop.f32.mrf.mxu3 }
 0x344   :  { %v332_v32 = vpop.f32.mrf.mxu3 }
 0x34c   :  { %v414_v33 = vpop.f32.mrf.mxu3 }
 0x34d   :  { %v418_v34 = vmul.f32 0.35355338, %v414_v33 }
 0x34f   :  { %v422_v35 = vsel %vm101_vm1, %v418_v34, -inf }
 0x350   :  { %423 = vmax.xlane.f32.xlu2 %v422_v35 }
 0x36b   :  { %v358_v36 = vpop.f32.mrf.mxu1 }
 0x37e   :  { %v464_v37 = vpop.f32.mrf.mxu1  ;;  %v518_v38 = vpop.f32.mrf.mxu3 }
 0x37f   :  { %v549_v39 = vmul.f32 0.35355338, %v518_v38 }
 0x381   :  { %v551_v40 = vsel %vm101_vm1, %v549_v39, -inf }
 0x382   :  { %552 = vmax.xlane.f32.xlu0 %v551_v40 }
 0x386   :  { %v546_v41 = vpop.f32.mrf.mxu1 }
 0x387   :  { %v550_v42 = vmul.f32 0.35355338, %v546_v41 }
 0x389   :  { %v554_v43 = vsel %vm101_vm1, %v550_v42, -inf }
 0x38a   :  { %555 = vmax.xlane.f32.xlu1 %v554_v43 }
 0x396   :  { %573 = vrot.lane.b32.xlu0 %v947_v14, %s860_s25 }
 0x39e   :  { %635 = vrot.lane.b32.xlu0 %v464_v37, %s861_s26 }
 0x3c3   :  { %v424_v44 = vpop.xlane.xlu2 %423 }
 0x3c4   :  { %v426_v45 = vsub.f32 %v418_v34, %v424_v44 }
 0x3c6   :  { %v429_v46 = vmul.f32 1.442695, %v426_v45 }
 0x3c8   :  { %812 = vpow2.f32 %v429_v46 }
 0x3ce   :  { %v813_v47 = vpop.eup %812 }
 0x3cf   :  { %v434_v48 = vsel %vm101_vm1, %v813_v47, 0.0 }
 0x3d0   :  { %435 = vadd.xlane.f32.xlu1 %v434_v48 }
 0x3f5   :  { %v553_v49 = vpop.xlane.xlu0 %552 }
 0x3f6   :  { %v557_v50 = vsub.f32 %v549_v39, %v553_v49 }
 0x3f8   :  { %v559_v51 = vmul.f32 1.442695, %v557_v50 }
 0x3fa   :  { %814 = vpow2.f32 %v559_v51 }
 0x3fd   :  { %v556_v52 = vpop.xlane.xlu1 %555 }
 0x3fe   :  { %v558_v53 = vsub.f32 %v550_v42, %v556_v52 }
 0x400   :  { %v815_v54 = vpop.eup %814  ;;  %v561_v55 = vmul.f32 1.442695, %v558_v53 }
 0x401   :  { %v563_v14 = vsel %vm101_vm1, %v815_v54, 0.0 }
 0x402   :  { %816 = vpow2.f32 %v561_v55  ;;  %564 = vadd.xlane.f32.xlu1 %v563_v14 }
 0x408   :  { %v817_v56 = vpop.eup %816  ;;  %v574_v2 = vpop.permute.xlu0 %573 }
 0x409   :  { %v566_v57 = vsel %vm101_vm1, %v817_v56, 0.0 }
 0x40a   :  { %567 = vadd.xlane.f32.xlu2 %v566_v57 }
 0x410   :  { %v636_v13 = vpop.permute.xlu0 %635 }
 0x41b   :  { %467 = vrot.lane.b32.xlu1 %v951_v15, %s859_s24 }
 0x422   :  { %599 = vrot.lane.b32.xlu2 %v951_v15, %s860_s25 }
 0x423   :  { %627 = vrot.lane.b32.xlu1 %v332_v32, %s862_s27 }
 0x42a   :  { %629 = vrot.lane.b32.xlu2 %v358_v36, %s862_s27 }
 0x443   :  { %v436_v58 = vpop.xlane.xlu1 %435 }
 0x475   :  { %v565_v61 = vpop.xlane.xlu1 %564 }
 0x47d   :  { %v568_v59 = vpop.xlane.xlu2 %567 }
 0x47e   :  { %818 = vrcp.f32 %v568_v59 }
 0x47f   :  { %820 = vrcp.f32 %v436_v58 }
 0x480   :  { %822 = vrcp.f32 %v565_v61 }
 0x484   :  { %v819_v60 = vpop.eup %818 }
 0x485   :  { %v572_v62 = vmul.f32 %v819_v60, %v817_v56  ;;  %v600_v63 = vpop.permute.xlu2 %599  ;;  %v821_v0 = vpop.eup %820 }
 0x486   :  { %620 = vmatpush.msrb.mxu3 %v600_v63  ;;  %v440_v1 = vmul.f32 %v821_v0, %v813_v47  ;;  %v823_v3 = vpop.eup %822 }
 0x487   :  { %763 = vmatmul.msk.f32.vlgmr.msrb.gmra.mxu3 %vm101_vm1, %v572_v62  ;;  %v571_v4 = vmul.f32 %v823_v3, %v815_v54 }
 0x48d   :  { %v468_v15 = vpop.permute.xlu1 %467  ;;  %v630_v20 = vpop.permute.xlu2 %629 }
 0x48e   :  { %488 = vmatpush.msra.mxu2 %v468_v15  ;;  %v650_v22 = vsel %vm101_vm1, %v1016_v31, %v630_v20 }
 0x48f   :  { %757 = vmatmul.msk.f32.vlgmr.msra.gmra.mxu2 %vm101_vm1, %v440_v1 }
 0x490   :  { %594 = vmatpush.msrb.mxu2 %v574_v2 }
 0x495   :  { %v628_v12 = vpop.permute.xlu1 %627 }
 0x496   :  { %v649_v16 = vsel %vm101_vm1, %v1014_v30, %v628_v12 }
 0x497   :  { %762 = vmatmul.msk.f32.vlgmr.msrb.gmra.mxu2 %vm101_vm1, %v571_v4  ;;  %v652_v18 = vsel %vm651_vm2, %v649_v16, %v636_v13 }
 0x50a   :  { %v622_v9 = vpop.f32.mrf.mxu3 }
 0x512   :  { %v490_v7 = vpop.f32.mrf.mxu2 }
 0x513   :  { %637 = vrot.lane.b32.xlu0 %v490_v7, %s861_s26 }
 0x51a   :  { %v596_v8 = vpop.f32.mrf.mxu2 }
 0x51b   :  { %643 = vrot.lane.b32.xlu1 %v596_v8, %s863_s6 }
 0x523   :  { %645 = vrot.lane.b32.xlu1 %v622_v9, %s863_s6 }
 0x585   :  { %v638_v21 = vpop.permute.xlu0 %637 }
 0x586   :  { %v653_v23 = vsel %vm651_vm2, %v650_v22, %v638_v21 }
 0x58d   :  { %v644_v17 = vpop.permute.xlu1 %643 }
 0x58e   :  { %v655_v19 = vsel %vm654_vm3, %v652_v18, %v644_v17 }
 0x58f   :  { %768 = vmatmul.msk.f32.vlgmr.msra.gmra.mxu1 %vm32_vm0, %v655_v19 }
 0x595   :  { %v646_v24 = vpop.permute.xlu1 %645 }
 0x596   :  { %v656_v25 = vsel %vm654_vm3, %v653_v23, %v646_v24 }
 0x597   :  { %769 = vmatmul.msk.f32.gmra.mxu1 %vm32_vm0, %v656_v25 }
 0x60c   :  { %v700_v27 = vpop.f32.mrf.mxu1 }
 0x60d   :  { %v701_v28 = vadd.f32 %v791_v26, %v700_v27 }
 0x60f   :  { %706 = vst.msk [vmem:[#allocation2] sm:$0xff] %vm32_vm0, %v701_v28 }
 0x614   :  { %v703_v29 = vpop.f32.mrf.mxu1 }
 0x615   :  { %v704_v30 = vadd.f32 %v791_v26, %v703_v29 }
 0x617   :  { %707 = vst.msk [vmem:[#allocation2 + $0x8] sm:$0xff] %vm32_vm0, %v704_v30 }
 0x618   :  { %720 = dma.vmem_to_hbm [thread:$0]  %s713_s13, 256, %s715_s16, [#allocation3], %s865_s17, %s865_s17, %s862_s27  }
 0x619   :  { %848 = dma.done.wait [#allocation3], 256  }
 0x61a   :  { %849 = vsyncadd [#allocation3], 4294967040 }
 0x61b   :  { %725 = vsyncpa [#allocation3], 1 }

</bundles_post_ra>
